<compile_context>
chip_gen: v6e
topology: v6e:2x2x1
jax: 0.10.0
libtpu: 0.0.40
codegen_flags: <defaults>
</compile_context>

<pallas_src>
import functools
import math

import jax
import jax.numpy as jnp
from jax import lax
from jax.experimental import pallas as pl
from jax.experimental.pallas import tpu as pltpu

_SQRT_HALF = 1.0 / math.sqrt(2.0)


def _vmem_budget_bytes():
    """Generation-dependent VMEM budget with headroom for compiler scratch."""
    cap = 64 * 1024 * 1024          # safe default (v7x physical per-TC VMEM)
    try:
        info = pltpu.get_tpu_info()
        cap = int(getattr(info, "vmem_capacity_bytes", cap)) or cap
    except Exception:
        pass
    return (cap * 3) // 4           # ~48 MiB on v7x, ~96 MiB on v5e/v6e


_VMEM_BUDGET = _vmem_budget_bytes()


def _pick_tile(dim, target, align):
    """Largest multiple of `align` <= `target` that divides `dim`; else full dim."""
    if dim <= target or dim % align != 0:
        return dim
    t = (target // align) * align
    while t >= align:
        if dim % t == 0:
            return t
        t -= align
    return dim


def _gemm_row_tile(M, K, N, out_bytes, extra_row_bytes=0):
    """Row tile so that double-buffered tiles + resident bf16 weight + f32
    epilogue temporaries fit comfortably inside the VMEM budget."""
    budget = _VMEM_BUDGET // 2                       # headroom for compiler scratch
    fixed = 2 * K * N * 2                            # bf16 weight (worst case dbl-buf)
    per_row = 2 * K * 2 + 2 * N * out_bytes + 4 * N + extra_row_bytes
    if budget <= fixed:
        target = 256
    else:
        target = (budget - fixed) // per_row
    target = int(max(8, min(target, 2048)))
    return _pick_tile(M, target, 8)


# ----------------------------------------------------------------------------
# Row-tiled GEMM (+bias, +optional activation).  Full K, full N per block:
# no K grid axis, no VMEM accumulator, 1-D "parallel" grid.
# ----------------------------------------------------------------------------
def _matmul_kernel(x_ref, w_ref, b_ref, o_ref, *, activation):
    y = jnp.dot(x_ref[...], w_ref[...], preferred_element_type=jnp.float32)
    y = y + b_ref[...].astype(jnp.float32)
    if activation == "gelu":
        # exact BERT gelu (erf) for parity with pytorch_pretrained_bert.
        y = y * 0.5 * (1.0 + lax.erf(y * _SQRT_HALF))
    elif activation == "tanh":
        y = jnp.tanh(y)
    o_ref[...] = y.astype(o_ref.dtype)


def linear(x, w, b, activation="none", out_dtype=None, tm=None):
    M, K = x.shape
    N = w.shape[1]
    out_dtype = jnp.dtype(out_dtype or x.dtype)
    if tm is None:
        tm = _gemm_row_tile(M, K, N, out_dtype.itemsize)
    else:
        tm = _pick_tile(M, tm, 8)
    grid = (M // tm,)
    bytes_accessed = (M * K * x.dtype.itemsize + K * N * w.dtype.itemsize
                      + N * 4 + M * N * out_dtype.itemsize)
    transcendentals = M * N if activation in ("gelu", "tanh") else 0
    return pl.pallas_call(
        functools.partial(_matmul_kernel, activation=activation),
        out_shape=jax.ShapeDtypeStruct((M, N), out_dtype),
        grid=grid,
        in_specs=[
            pl.BlockSpec((tm, K), lambda i: (i, 0)),
            pl.BlockSpec((K, N), lambda i: (0, 0)),
            pl.BlockSpec((1, N), lambda i: (0, 0)),
        ],
        out_specs=pl.BlockSpec((tm, N), lambda i: (i, 0)),
        compiler_params=pltpu.CompilerParams(
            dimension_semantics=("parallel",),
            vmem_limit_bytes=_VMEM_BUDGET),
        cost_estimate=pl.CostEstimate(
            flops=2 * M * N * K, transcendentals=transcendentals,
            bytes_accessed=bytes_accessed),
    )(x, w, b.reshape(1, N))


# ----------------------------------------------------------------------------
# Row-tiled GEMM fused with residual-add + LayerNorm epilogue (full K, full N).
# ----------------------------------------------------------------------------
def _matmul_add_ln_kernel(x_ref, w_ref, b_ref, res_ref, g_ref, bb_ref,
                          o_ref, *, eps):
    h = (jnp.dot(x_ref[...], w_ref[...], preferred_element_type=jnp.float32)
         + b_ref[...].astype(jnp.float32)
         + res_ref[...].astype(jnp.float32))
    mu = jnp.mean(h, axis=-1, keepdims=True)
    var = jnp.mean((h - mu) * (h - mu), axis=-1, keepdims=True)
    y = (h - mu) * lax.rsqrt(var + eps)
    y = y * g_ref[...].astype(jnp.float32) + bb_ref[...].astype(jnp.float32)
    o_ref[...] = y.astype(o_ref.dtype)


def linear_add_layernorm(x, w, b, residual, gamma, beta, eps=1e-12,
                         out_dtype=None, tm=None):
    M, K = x.shape
    N = w.shape[1]                       # == hidden size (full LN row per block)
    out_dtype = jnp.dtype(out_dtype or residual.dtype)
    if tm is None:
        tm = _gemm_row_tile(M, K, N, out_dtype.itemsize,
                            extra_row_bytes=2 * N * residual.dtype.itemsize)
    else:
        tm = _pick_tile(M, tm, 8)
    grid = (M // tm,)
    bytes_accessed = (M * K * x.dtype.itemsize + K * N * w.dtype.itemsize
                      + M * N * residual.dtype.itemsize + 3 * N * 4
                      + M * N * out_dtype.itemsize)
    return pl.pallas_call(
        functools.partial(_matmul_add_ln_kernel, eps=eps),
        out_shape=jax.ShapeDtypeStruct((M, N), out_dtype),
        grid=grid,
        in_specs=[
            pl.BlockSpec((tm, K), lambda i: (i, 0)),
            pl.BlockSpec((K, N), lambda i: (0, 0)),
            pl.BlockSpec((1, N), lambda i: (0, 0)),
            pl.BlockSpec((tm, N), lambda i: (i, 0)),
            pl.BlockSpec((1, N), lambda i: (0, 0)),
            pl.BlockSpec((1, N), lambda i: (0, 0)),
        ],
        out_specs=pl.BlockSpec((tm, N), lambda i: (i, 0)),
        compiler_params=pltpu.CompilerParams(
            dimension_semantics=("parallel",),
            vmem_limit_bytes=_VMEM_BUDGET),
        cost_estimate=pl.CostEstimate(
            flops=2 * M * N * K + 8 * M * N, transcendentals=M,
            bytes_accessed=bytes_accessed),
    )(x, w, b.reshape(1, N), residual, gamma.reshape(1, N), beta.reshape(1, N))


# ----------------------------------------------------------------------------
# Plain row-tiled LayerNorm (embedding LN; no residual stream)
# ----------------------------------------------------------------------------
def _ln_kernel(x_ref, g_ref, b_ref, o_ref, *, eps):
    h = x_ref[...].astype(jnp.float32)
    mu = jnp.mean(h, axis=-1, keepdims=True)
    var = jnp.mean((h - mu) * (h - mu), axis=-1, keepdims=True)
    y = (h - mu) * lax.rsqrt(var + eps)
    o_ref[...] = (y * g_ref[...].astype(jnp.float32)
                  + b_ref[...].astype(jnp.float32)).astype(o_ref.dtype)


def layernorm(x, gamma, beta, eps=1e-12, out_dtype=None, tm=2048):
    M, H = x.shape
    out_dtype = out_dtype or x.dtype
    tm = _pick_tile(M, tm, 8)
    return pl.pallas_call(
        functools.partial(_ln_kernel, eps=eps),
        out_shape=jax.ShapeDtypeStruct((M, H), out_dtype),
        grid=(M // tm,),
        in_specs=[pl.BlockSpec((tm, H), lambda i: (i, 0)),
                  pl.BlockSpec((1, H), lambda i: (0, 0)),
                  pl.BlockSpec((1, H), lambda i: (0, 0))],
        out_specs=pl.BlockSpec((tm, H), lambda i: (i, 0)),
        compiler_params=pltpu.CompilerParams(
            dimension_semantics=("parallel",),
            vmem_limit_bytes=_VMEM_BUDGET),
    )(x, gamma.reshape(1, H), beta.reshape(1, H))


# ----------------------------------------------------------------------------
# Self-attention on packed (B, S, 3H) QKV — one batch per grid step; per-head
# ref-sliced loads and direct per-head stores (no full-slab load, no concat,
# no JAX-level head transposes).
# ----------------------------------------------------------------------------
def _attn_kernel(qkv_ref, m_ref, o_ref, *, n_heads, d_head, scale):
    mask = m_ref[0]                        # (1, S) additive f32, broadcast on query
    H = n_heads * d_head
    for h in range(n_heads):
        q = qkv_ref[0, :, h * d_head:(h + 1) * d_head]
        k = qkv_ref[0, :, H + h * d_head:H + (h + 1) * d_head]
        v = qkv_ref[0, :, 2 * H + h * d_head:2 * H + (h + 1) * d_head]
        # contract the dH axes directly (no materialized K transpose)
        s = lax.dot_general(q, k, (((1,), (1,)), ((), ())),
                            preferred_element_type=jnp.float32)
        s = s * scale + mask
        s = s - jnp.max(s, axis=-1, keepdims=True)
        p = jnp.exp(s)
        # approx reciprocal + bf16 P deviates slightly from an f32 reference
        # softmax (fine for bf16 inference tolerances).
        p = p * pl.reciprocal(jnp.sum(p, axis=-1, keepdims=True), approx=True)
        ctx = jnp.dot(p.astype(v.dtype), v, preferred_element_type=jnp.float32)
        o_ref[0, :, h * d_head:(h + 1) * d_head] = ctx.astype(o_ref.dtype)


def attention(qkv, ext_mask, n_heads):
    # qkv: (B, S, 3H) packed [Q|K|V]; ext_mask: (B, 1, S) additive f32 mask
    B, S, threeH = qkv.shape
    H = threeH // 3
    d_head = H // n_heads
    scale = 1.0 / math.sqrt(d_head)
    return pl.pallas_call(
        functools.partial(_attn_kernel, n_heads=n_heads, d_head=d_head,
                          scale=scale),
        out_shape=jax.ShapeDtypeStruct((B, S, H), qkv.dtype),
        grid=(B,),
        in_specs=[pl.BlockSpec((1, S, threeH), lambda b: (b, 0, 0)),
                  pl.BlockSpec((1, 1, S), lambda b: (b, 0, 0))],
        out_specs=pl.BlockSpec((1, S, H), lambda b: (b, 0, 0)),
        compiler_params=pltpu.CompilerParams(
            dimension_semantics=("parallel",),
            vmem_limit_bytes=_VMEM_BUDGET),
        cost_estimate=pl.CostEstimate(
            flops=4 * B * n_heads * S * S * d_head,
            transcendentals=B * n_heads * S * S,
            bytes_accessed=(B * S * threeH + B * S * H) * qkv.dtype.itemsize),
    )(qkv, ext_mask)


# ----------------------------------------------------------------------------
# Model glue (plain JAX between pallas_calls)
# ----------------------------------------------------------------------------
def prepare_params(params, compute_dtype=jnp.bfloat16):
    """One-time parameter prep: fuse Q/K/V into one (H,3H) GEMM and cast
    MXU-side weights to bf16 (hoisted out of the forward pass)."""
    layers = []
    for p in params["layers"]:
        layers.append({
            "qkv_w": jnp.concatenate([p["q_w"], p["k_w"], p["v_w"]],
                                     axis=1).astype(compute_dtype),
            "qkv_b": jnp.concatenate([p["q_b"], p["k_b"], p["v_b"]]),
            "ao_w": p["ao_w"].astype(compute_dtype), "ao_b": p["ao_b"],
            "ao_ln_g": p["ao_ln_g"], "ao_ln_b": p["ao_ln_b"],
            "i_w": p["i_w"].astype(compute_dtype), "i_b": p["i_b"],
            "o_w": p["o_w"].astype(compute_dtype), "o_b": p["o_b"],
            "o_ln_g": p["o_ln_g"], "o_ln_b": p["o_ln_b"],
        })
    return {
        "hidden": params["hidden"], "n_heads": params["n_heads"],
        "compute_dtype": compute_dtype,
        "word_emb": params["word_emb"],
        "pos_emb": params["pos_emb"],
        "type_emb_row0": params["type_emb"][0],      # token_type_ids == 0
        "emb_ln_g": params["emb_ln_g"], "emb_ln_b": params["emb_ln_b"],
        "layers": layers,
        "pool_w": params["pool_w"].astype(compute_dtype),
        "pool_b": params["pool_b"],
    }


def bert_layer(h, ext_mask, p, B, S, n_heads, out_dtype):
    H = h.shape[-1]
    qkv = linear(h, p["qkv_w"], p["qkv_b"])                       # (B*S, 3H)
    ctx = attention(qkv.reshape(B, S, 3 * H), ext_mask, n_heads)  # (B, S, H)
    ctx = ctx.reshape(B * S, H)
    h1 = linear_add_layernorm(ctx, p["ao_w"], p["ao_b"], h,
                              p["ao_ln_g"], p["ao_ln_b"])
    inter = linear(h1, p["i_w"], p["i_b"], activation="gelu")
    h2 = linear_add_layernorm(inter, p["o_w"], p["o_b"], h1,
                              p["o_ln_g"], p["o_ln_b"], out_dtype=out_dtype)
    return h2


def bert_forward(prepared, input_ids, attention_mask=None):
    dtype = prepared["compute_dtype"]
    B, S = input_ids.shape
    H = prepared["hidden"]
    n_heads = prepared["n_heads"]

    if attention_mask is None:
        attention_mask = jnp.ones_like(input_ids)
    # extended additive mask: (1 - mask) * -10000, broadcast over query axis
    ext_mask = ((1.0 - attention_mask.astype(jnp.float32)) * -10000.0
                ).reshape(B, 1, S)

    # Embeddings: word + position + token_type (token_type_ids = zeros)
    we = jnp.take(prepared["word_emb"], input_ids, axis=0)         # (B, S, H)
    pe = prepared["pos_emb"][:S][None, :, :]                       # (1, S, H)
    te = prepared["type_emb_row0"][None, None, :]                  # (1, 1, H)
    emb = (we + pe + te).reshape(B * S, H)
    h = layernorm(emb, prepared["emb_ln_g"], prepared["emb_ln_b"],
                  out_dtype=dtype)

    n_layers = len(prepared["layers"])
    for li, lp in enumerate(prepared["layers"]):
        last = (li == n_layers - 1)
        # fuse the final f32 upcast into the last layer's LN epilogue
        h = bert_layer(h, ext_mask, lp, B, S, n_heads,
                       out_dtype=jnp.float32 if last else dtype)

    encoder_seq = h.reshape(B, S, H)                               # f32
    # Pooler: dense + tanh on first ([CLS]) token
    cls = encoder_seq[:, 0, :].astype(dtype)
    pooled = linear(cls, prepared["pool_w"], prepared["pool_b"],
                    activation="tanh", out_dtype=jnp.float32)
    return encoder_seq, pooled


# ----------------------------------------------------------------------------
# Deterministic synthetic parameter init (shapes per BertModel config)
# ----------------------------------------------------------------------------
def init_params(key, vocab=100, hidden=32, n_layers=2, n_heads=4,
                intermediate=64, max_pos=32, type_vocab=2):
    keys = iter(jax.random.split(key, 4 + n_layers * 6 + 1))
    nrm = lambda shape: (0.02 * jax.random.normal(next(keys), shape)
                         ).astype(jnp.float32)
    params = {
        "hidden": hidden, "n_heads": n_heads,
        "word_emb": nrm((vocab, hidden)),
        "pos_emb": nrm((max_pos, hidden)),
        "type_emb": nrm((type_vocab, hidden)),
        "emb_ln_g": jnp.ones((hidden,), jnp.float32),
        "emb_ln_b": jnp.zeros((hidden,), jnp.float32),
        "layers": [],
        "pool_w": None, "pool_b": None,
    }
    for _ in range(n_layers):
        layer = {
            "q_w": nrm((hidden, hidden)), "q_b": jnp.zeros((hidden,), jnp.float32),
            "k_w": nrm((hidden, hidden)), "k_b": jnp.zeros((hidden,), jnp.float32),
            "v_w": nrm((hidden, hidden)), "v_b": jnp.zeros((hidden,), jnp.float32),
            "ao_w": nrm((hidden, hidden)), "ao_b": jnp.zeros((hidden,), jnp.float32),
            "ao_ln_g": jnp.ones((hidden,), jnp.float32),
            "ao_ln_b": jnp.zeros((hidden,), jnp.float32),
            "i_w": nrm((hidden, intermediate)),
            "i_b": jnp.zeros((intermediate,), jnp.float32),
            "o_w": nrm((intermediate, hidden)),
            "o_b": jnp.zeros((hidden,), jnp.float32),
            "o_ln_g": jnp.ones((hidden,), jnp.float32),
            "o_ln_b": jnp.zeros((hidden,), jnp.float32),
        }
        params["layers"].append(layer)
    params["pool_w"] = nrm((hidden, hidden))
    params["pool_b"] = jnp.zeros((hidden,), jnp.float32)
    return params


if __name__ == "__main__":
    B, S = 2, 8
    VOCAB, HIDDEN, LAYERS, HEADS, INTER = 100, 32, 2, 4, 64

    key = jax.random.PRNGKey(0)
    k_param, k_ids = jax.random.split(key)
    params = init_params(k_param, vocab=VOCAB, hidden=HIDDEN, n_layers=LAYERS,
                         n_heads=HEADS, intermediate=INTER)
    prepared = prepare_params(params, compute_dtype=jnp.bfloat16)

    seqs = jax.random.randint(k_ids, (B, S), 0, VOCAB, dtype=jnp.int32)
    attention_mask = jnp.ones((B, S), dtype=jnp.int32)

    encoder_seq, pooled_output = bert_forward(prepared, seqs, attention_mask)
    jax.block_until_ready((encoder_seq, pooled_output))

    assert encoder_seq.shape == (B, S, HIDDEN)
    assert pooled_output.shape == (B, HIDDEN)
    assert encoder_seq.dtype == jnp.float32
    assert pooled_output.dtype == jnp.float32
    print("KERNEL_OK")
</pallas_src>

<mosaic_0001>
module attributes {stable_mosaic.version = 11 : i64} {
  func.func @_ln_kernel(%arg0: i32, %arg1: memref<16x32xf32, #tpu.memory_space<vmem>>, %arg2: memref<1x32xf32, #tpu.memory_space<vmem>>, %arg3: memref<1x32xf32, #tpu.memory_space<vmem>>, %arg4: memref<16x32xbf16, #tpu.memory_space<vmem>>) attributes {dimension_semantics = [#tpu.dimension_semantics<parallel>], iteration_bounds = array<i64: 1>, scalar_prefetch = 0 : i64, scratch_operands = 0 : i64, tpu.core_type = #tpu.core_type<tc>, window_params = [{transform_indices = @transform_0, window_bounds = array<i64: 16, 32>}, {pipeline_mode = #tpu.pipeline_mode<synchronous>, transform_indices = @transform_1, window_bounds = array<i64: 1, 32>}, {pipeline_mode = #tpu.pipeline_mode<synchronous>, transform_indices = @transform_2, window_bounds = array<i64: 1, 32>}, {transform_indices = @transform_3, window_bounds = array<i64: 16, 32>}]} {
    %c0 = arith.constant 0 : index
    %c0_0 = arith.constant 0 : index
    %0 = vector.load %arg1[%c0, %c0_0] : memref<16x32xf32, #tpu.memory_space<vmem>>, vector<16x32xf32>
    %cst = arith.constant dense<0.000000e+00> : vector<16xf32>
    %1 = vector.multi_reduction <add>, %0, %cst [1] : vector<16x32xf32> to vector<16xf32>
    %2 = vector.shape_cast %1 : vector<16xf32> to vector<16x1xf32>
    %cst_1 = arith.constant 3.200000e+01 : f32
    %3 = vector.broadcast %cst_1 : f32 to vector<16x1xf32>
    %4 = arith.divf %2, %3 : vector<16x1xf32>
    %5 = vector.broadcast %4 : vector<16x1xf32> to vector<16x32xf32>
    %6 = arith.subf %0, %5 : vector<16x32xf32>
    %7 = vector.broadcast %4 : vector<16x1xf32> to vector<16x32xf32>
    %8 = arith.subf %0, %7 : vector<16x32xf32>
    %9 = arith.mulf %6, %8 : vector<16x32xf32>
    %cst_2 = arith.constant dense<0.000000e+00> : vector<16xf32>
    %10 = vector.multi_reduction <add>, %9, %cst_2 [1] : vector<16x32xf32> to vector<16xf32>
    %11 = vector.shape_cast %10 : vector<16xf32> to vector<16x1xf32>
    %cst_3 = arith.constant 3.200000e+01 : f32
    %12 = vector.broadcast %cst_3 : f32 to vector<16x1xf32>
    %13 = arith.divf %11, %12 : vector<16x1xf32>
    %14 = vector.broadcast %4 : vector<16x1xf32> to vector<16x32xf32>
    %15 = arith.subf %0, %14 : vector<16x32xf32>
    %cst_4 = arith.constant 9.99999996E-13 : f32
    %16 = vector.broadcast %cst_4 : f32 to vector<16x1xf32>
    %17 = arith.addf %13, %16 : vector<16x1xf32>
    %18 = math.rsqrt %17 : vector<16x1xf32>
    %19 = vector.broadcast %18 : vector<16x1xf32> to vector<16x32xf32>
    %20 = arith.mulf %15, %19 : vector<16x32xf32>
    %c0_5 = arith.constant 0 : index
    %c0_6 = arith.constant 0 : index
    %21 = vector.load %arg2[%c0_5, %c0_6] : memref<1x32xf32, #tpu.memory_space<vmem>>, vector<1x32xf32>
    %22 = vector.broadcast %21 : vector<1x32xf32> to vector<16x32xf32>
    %23 = arith.mulf %20, %22 : vector<16x32xf32>
    %c0_7 = arith.constant 0 : index
    %c0_8 = arith.constant 0 : index
    %24 = vector.load %arg3[%c0_7, %c0_8] : memref<1x32xf32, #tpu.memory_space<vmem>>, vector<1x32xf32>
    %25 = vector.broadcast %24 : vector<1x32xf32> to vector<16x32xf32>
    %26 = arith.addf %23, %25 : vector<16x32xf32>
    %27 = arith.truncf %26 : vector<16x32xf32> to vector<16x32xbf16>
    %c0_9 = arith.constant 0 : index
    %c0_10 = arith.constant 0 : index
    %28 = vector.load %arg4[%c0_9, %c0_10] : memref<16x32xbf16, #tpu.memory_space<vmem>>, vector<16x32xbf16>
    tpu.vector_store %arg4[%c0_9, %c0_10], %27 {strides = array<i32>} : memref<16x32xbf16, #tpu.memory_space<vmem>>, vector<16x32xbf16>,
    return
  }
  func.func @transform_0(%arg0: i32) -> (i32, i32) {
    %c0_i32 = arith.constant 0 : i32
    %c0_i32_0 = arith.constant 0 : i32
    return %arg0, %c0_i32 : i32, i32
  }
  func.func @transform_1(%arg0: i32) -> (i32, i32) {
    %c0_i32 = arith.constant 0 : i32
    %c0_i32_0 = arith.constant 0 : i32
    %c0_i32_1 = arith.constant 0 : i32
    return %c0_i32, %c0_i32_0 : i32, i32
  }
  func.func @transform_2(%arg0: i32) -> (i32, i32) {
    %c0_i32 = arith.constant 0 : i32
    %c0_i32_0 = arith.constant 0 : i32
    %c0_i32_1 = arith.constant 0 : i32
    return %c0_i32, %c0_i32_0 : i32, i32
  }
  func.func @transform_3(%arg0: i32) -> (i32, i32) {
    %c0_i32 = arith.constant 0 : i32
    %c0_i32_0 = arith.constant 0 : i32
    return %arg0, %c0_i32 : i32, i32
  }
}

</mosaic_0001>

<bundles_post_ra>
// kernel: tpu_custom_call.1
= control target key start
LH: loop header
LB: loop body
LE: loop exit
PB: predicated region body
PF: predicated region fallthrough
CT: control target
= control target key end

     0   :  { %8 = vsyncpa [#allocation3], 0  ;;  %s207_s0 = inlined_call_operand.hbm [shape: f32[16,32], index: 0, kind: input, shape index: {}]   ;;  %s208_s1 = inlined_call_operand.vmem [shape: f32[1,32], index: 1, kind: input, shape index: {}]   ;;  %s209_s2 = inlined_call_operand.vmem [shape: f32[1,32], index: 2, kind: input, shape index: {}]   ;;  %s210_s3 = inlined_call_operand.hbm [shape: bf16[16,32], index: 3, kind: output, shape index: {}]  }
   0x1   :  { %9 = vsyncpa [#allocation4], 0  ;;  %s165_s12 = smov [#allocation2]  }
   0x2   :  { %s15_s13 = sshll.u32 %s165_s12, 4  ;;  %s16_s13 = int_to_ptr.vmem [resolvable:$true] %s15_s13 }
   0x3   :  { %s129_s14 = scalar_lea.vmem %s16_s13, 256  ;;  %p134_p1 = scmp.lt.s32.totalorder %s16_s13, %s16_s13 }
   0x4   :  { %p130_p0 = scmp.ne.s32.totalorder %s16_s13, %s129_s14  ;;  %p135_p2 = scmp.lt.s32.totalorder %s129_s14, %s129_s14 }
   0x6   :  { %p136_p3 = por %p135_p2, %p134_p1 }
   0x8   :  { %p137_p4 = pnand %p136_p3, %p130_p0 }
   0xa   :  { %140 = shalt.err (!%p137_p4)
}
   0xb   :  { %s166_s15 = smov 128   ;;  %s167_s16 = smov 8  }
   0xc   :  { %21 = dma.hbm_to_vmem [thread:$0]  %s207_s0, 256, %s16_s13, [#allocation3], %s166_s15, %s166_s15, %s167_s16  }
   0xd   :  { %161 = dma.done.wait [#allocation3], 256  }
   0xe   :  { %162 = vsyncadd [#allocation3], 4294967040  ;;  %vm31_vm0 = vcmask 261120   ;;  %v29_v0 = vld [vmem:[#allocation2] sm:$0xff]  ;;  %v30_v1 = vld [vmem:[#allocation2 + $0x8] sm:$0xff]  ;;  %vm85_vm1 = vcmask 257024  }
   0xf   :  { %v32_v2 = vsel %vm31_vm0, %v29_v0, 0.0  ;;  %v35_v3 = vsel %vm31_vm0, %v30_v1, 0.0  ;;  %v105_v21 = vld [vmem:[%s208_s1] ss:$0 sm:$0xff]  ;;  %s168_s22 = smov [#allocation5]  }
  0x10   :  { %33 = vadd.xlane.f32.xlu0 %v32_v2  ;;  %v106_v23 = vld [vmem:[%s209_s2] ss:$0 sm:$0xff]  ;;  %s93_s23 = sshll.u32 %s168_s22, 4  ;;  %s94_s23 = int_to_ptr.vmem [resolvable:$true] %s93_s23 }
  0x11   :  { %s141_s1 = scalar_lea.vmem %s94_s23, 128  ;;  %p146_p6 = scmp.lt.s32.totalorder %s94_s23, %s94_s23 }
  0x12   :  { %p142_p5 = scmp.ne.s32.totalorder %s94_s23, %s141_s1  ;;  %p147_p7 = scmp.lt.s32.totalorder %s141_s1, %s141_s1 }
  0x14   :  { %36 = vadd.xlane.f32.xlu0 %v35_v3  ;;  %p148_p8 = por %p147_p7, %p146_p6 }
  0x16   :  { %p149_p9 = pnand %p148_p8, %p142_p5 }
  0x99   :  { %v34_v4 = vpop.xlane.xlu0 %33 }
  0x9a   :  { %v39_v5 = vmul.f32 0.03125, %v34_v4 }
  0x9c   :  { %v41_v6 = vsub.f32 %v29_v0, %v39_v5 }
  0x9d   :  { %v37_v7 = vpop.xlane.xlu0 %36 }
  0x9e   :  { %v40_v8 = vmul.f32 0.03125, %v37_v7  ;;  %v43_v9 = vmul.f32 %v41_v6, %v41_v6 }
  0xa0   :  { %v42_v10 = vsub.f32 %v30_v1, %v40_v8  ;;  %v45_v11 = vsel %vm31_vm0, %v43_v9, 0.0 }
  0xa1   :  { %46 = vadd.xlane.f32.xlu1 %v45_v11 }
  0xa2   :  { %v44_v12 = vmul.f32 %v42_v10, %v42_v10 }
  0xa4   :  { %v48_v13 = vsel %vm31_vm0, %v44_v12, 0.0 }
  0xa5   :  { %49 = vadd.xlane.f32.xlu1 %v48_v13 }
 0x12a   :  { %v47_v14 = vpop.xlane.xlu1 %46 }
 0x12b   :  { %v51_v15 = vmul.f32 0.03125, %v47_v14 }
 0x12d   :  { %v53_v16 = vadd.f32 1e-12, %v51_v15 }
 0x12e   :  { %v50_v17 = vpop.xlane.xlu1 %49 }
 0x12f   :  { %117 = vrsqrt.f32 %v53_v16  ;;  %v52_v18 = vmul.f32 0.03125, %v50_v17 }
 0x131   :  { %v54_v19 = vadd.f32 1e-12, %v52_v18 }
 0x133   :  { %119 = vrsqrt.f32 %v54_v19 }
 0x13c   :  { %v118_v20 = vpop.eup %117 }
 0x13d   :  { %v57_v22 = vmul.f32 %v118_v20, %v41_v6 }
 0x13f   :  { %v66_v24 = vmul.f32 %v105_v21, %v57_v22 }
 0x140   :  { %v120_v25 = vpop.eup %119 }
 0x141   :  { %v58_v26 = vmul.f32 %v120_v25, %v42_v10  ;;  %v75_v27 = vadd.f32 %v106_v23, %v66_v24 }
 0x143   :  { %v67_v28 = vmul.f32 %v105_v21, %v58_v26  ;;  %v109_v29 = vpack.c.bf16 %v75_v27, %v75_v27 }
 0x145   :  { %v76_v30 = vadd.f32 %v106_v23, %v67_v28  ;;  %86 = vst.msk [vmem:[#allocation5] sm:$0xf] %vm85_vm1, %v109_v29 }
 0x147   :  { %v110_v31 = vpack.c.bf16 %v76_v30, %v76_v30 }
 0x149   :  { %87 = vst.msk [vmem:[#allocation5 + $0x4] sm:$0xf] %vm85_vm1, %v110_v31 }
 0x14a   :  { %152 = shalt.err (!%p149_p9)
}
 0x14b   :  { %s169_s2 = smov 64   ;;  %s170_s24 = smov 4  }
 0x14c   :  { %99 = dma.vmem_to_hbm [thread:$0]  %s94_s23, 128, %s210_s3, [#allocation4], %s169_s2, %s169_s2, %s170_s24  }
 0x14d   :  { %163 = dma.done.wait [#allocation4], 128  }
 0x14e   :  { %164 = vsyncadd [#allocation4], 4294967168 }
 0x14f   :  { %103 = vsyncpa [#allocation3], 1 }
 0x150   :  { %104 = vsyncpa [#allocation4], 1 }

</bundles_post_ra>
